<compile_context>
chip_gen: v6e
topology: v6e:2x2x1
jax: 0.10.0
libtpu: 0.0.40
codegen_flags: <defaults>
</compile_context>

<pallas_src>
import functools

import jax
import jax.numpy as jnp
from jax import lax
from jax.experimental import pallas as pl
from jax.experimental.pallas import tpu as pltpu

EPS = 1e-8
_LANE = 128


def _fused_loss_kernel(est_ref, gt_ref, out_ref,
                       se_ref, sg_ref, seg_ref, see_ref, sgg_ref,
                       *, n_time: float, lanes_per_tile: int,
                       t_valid_last: int, needs_mask: bool, unroll: int):
    """Grid = (batch_chunks, time_tiles). Accumulate raw moments over time; finalize at last tile."""
    t = pl.program_id(1)
    nt = pl.num_programs(1)

    @pl.when(t == 0)
    def _init():
        zeros = jnp.zeros(se_ref.shape, jnp.float32)
        se_ref[...] = zeros
        sg_ref[...] = zeros
        seg_ref[...] = zeros
        see_ref[...] = zeros
        sgg_ref[...] = zeros

    def _accumulate(mask_tail: bool):
        def body(j, carry):
            se, sg, seg, see, sgg = carry
            start = pl.multiple_of(j * _LANE, _LANE)
            ej = est_ref[:, pl.ds(start, _LANE)].astype(jnp.float32)   # (BC, 128)
            gj = gt_ref[:, pl.ds(start, _LANE)].astype(jnp.float32)
            if mask_tail:
                # Only on the final time tile: zero the out-of-bounds tail columns.
                col = start + lax.broadcasted_iota(jnp.int32, ej.shape, 1)
                valid = col < t_valid_last
                ej = jnp.where(valid, ej, 0.0)
                gj = jnp.where(valid, gj, 0.0)
            return (se + ej, sg + gj, seg + ej * gj,
                    see + ej * ej, sgg + gj * gj)

        carry = (se_ref[...], sg_ref[...], seg_ref[...],
                 see_ref[...], sgg_ref[...])
        carry = lax.fori_loop(0, lanes_per_tile, body, carry,
                              unroll=min(unroll, lanes_per_tile))
        se_ref[...], sg_ref[...], seg_ref[...], see_ref[...], sgg_ref[...] = carry

    if needs_mask:
        # Keep the steady-state loop free of masking VPU work; only the final
        # tile pays for the where().
        @pl.when(t < nt - 1)
        def _steady():
            _accumulate(False)

        @pl.when(t == nt - 1)
        def _tail():
            _accumulate(True)
    else:
        _accumulate(False)

    @pl.when(t == nt - 1)
    def _finalize():
        inv_n = jnp.float32(1.0 / n_time)
        # Single cross-lane (XLU) reduce per moment, only in the epilogue.
        s_e = jnp.sum(se_ref[...], axis=1, keepdims=True)    # (BC, 1)
        s_g = jnp.sum(sg_ref[...], axis=1, keepdims=True)
        s_eg = jnp.sum(seg_ref[...], axis=1, keepdims=True)
        s_ee = jnp.sum(see_ref[...], axis=1, keepdims=True)
        s_gg = jnp.sum(sgg_ref[...], axis=1, keepdims=True)

        # Centered (zero_mean=True) quantities from raw moments.
        dot = s_eg - s_e * s_g * inv_n          # Σ e_c * g_c
        gg = s_gg - s_g * s_g * inv_n           # Σ g_c²   (reused by both branches)
        ee = s_ee - s_e * s_e * inv_n           # Σ e_c²

        # SI-SDR branch.
        alpha = dot / (gg + EPS)                # dot / s_target_energy
        scaled_energy = alpha * alpha * gg      # Σ scaled_target²
        e_si_energy = ee - 2.0 * alpha * dot + scaled_energy
        si_ratio = scaled_energy / (e_si_energy + EPS)

        # SNR branch.
        e_snr_energy = ee + gg - 2.0 * dot      # Σ (e_c - g_c)²
        snr_ratio = gg / (e_snr_energy + EPS)

        # neg SI-SDR + neg SNR, two log10s fused into one.
        loss = -10.0 * jnp.log10((si_ratio + EPS) * (snr_ratio + EPS))   # (BC, 1)

        # Sum over this batch chunk; the final mean over B happens in the wrapper.
        out_ref[...] = jnp.sum(loss, axis=0, keepdims=True)              # (1, 1)


def _round_up(x: int, m: int) -> int:
    return ((x + m - 1) // m) * m


def _vmem_capacity_bytes() -> int:
    try:
        return int(pltpu.get_tpu_info().vmem_capacity_bytes)
    except Exception:
        return 64 << 20   # conservative fallback (v7x per-TC physical VMEM)


def fused_loss(est: jax.Array, gt: jax.Array, *,
               t_tile_cap: int | None = None) -> jax.Array:
    """est, gt: (batch, time). Returns scalar fused (neg SI-SDR + neg SNR) loss."""
    assert est.shape == gt.shape and est.ndim == 2
    B, T = est.shape

    # Keep bf16/f32 inputs in their HBM dtype (halves HBM traffic for bf16);
    # anything else falls back to f32. Upcast happens per-chunk in-kernel.
    if est.dtype not in (jnp.float32, jnp.bfloat16):
        est = est.astype(jnp.float32)
    gt = gt.astype(est.dtype)
    dtype_bytes = est.dtype.itemsize
    sub = 8 if dtype_bytes == 4 else 16        # sublane granularity (f32 vs packed bf16)

    # Batch chunking: small chunks (=sublane granule) whenever B allows, so the batch
    # grid axis has >=2 'parallel' chunks for the v7x megacore and the 5 accumulators
    # stay at 5 live vregs; otherwise one chunk spanning the full batch.
    if B % sub == 0 and B > sub:
        bc = sub
    else:
        bc = B
    num_bc = B // bc

    # Time tiling: multiple-of-128 tiles sized from the chip's physical VMEM so each
    # input block is multi-MiB (amortizes the ~0.35 us per-step overhead) while the
    # double-buffered working set (2 inputs x 2 buffers x block) stays ~1/4 of VMEM.
    vmem_cap = _vmem_capacity_bytes()
    stream_budget = max(vmem_cap // 4, 4 << 20)
    block_budget = stream_budget // 4          # 2 inputs x 2 pipeline buffers
    max_tile = max(_LANE, (block_budget // (bc * dtype_bytes)) // _LANE * _LANE)
    if t_tile_cap is not None:                 # test hook only
        max_tile = max(_LANE, min(max_tile, _round_up(t_tile_cap, _LANE)))

    t128 = _round_up(T, _LANE)
    t_tile = min(max_tile, t128)
    num_t = pl.cdiv(t128, t_tile)
    t_tile = _round_up(pl.cdiv(t128, num_t), _LANE)   # balanced tiles
    num_t = pl.cdiv(t128, t_tile)

    # Valid columns in the final time tile; if ragged, the kernel masks them in-place
    # (no wrapper-level jnp.pad -> no extra HBM pass over the inputs).
    t_valid_last = T - (num_t - 1) * t_tile
    needs_mask = t_valid_last < t_tile

    block_bytes = bc * t_tile * dtype_bytes
    vmem_limit = int(min(vmem_cap, 4 * block_bytes + (8 << 20)))

    in_spec = pl.BlockSpec((bc, t_tile), lambda b, t: (b, t))
    # Output indexed by batch chunk on a *leading* (squeezed) axis so the last-two block
    # dims always equal the full array dims.
    out_spec = pl.BlockSpec((None, 1, 1), lambda b, t: (b, 0, 0))

    kernel = functools.partial(
        _fused_loss_kernel,
        n_time=float(T),
        lanes_per_tile=t_tile // _LANE,
        t_valid_last=int(t_valid_last),
        needs_mask=bool(needs_mask),
        unroll=8,
    )

    cost = pl.CostEstimate(
        flops=8 * B * T,
        transcendentals=2 * B,
        bytes_accessed=2 * B * T * dtype_bytes + num_bc * 4,
    )

    partial_sums = pl.pallas_call(
        kernel,
        out_shape=jax.ShapeDtypeStruct((num_bc, 1, 1), jnp.float32),
        grid_spec=pltpu.PrefetchScalarGridSpec(
            num_scalar_prefetch=0,
            grid=(num_bc, num_t),
            in_specs=[in_spec, in_spec],
            out_specs=out_spec,
            scratch_shapes=[pltpu.VMEM((bc, _LANE), jnp.float32)] * 5,
        ),
        compiler_params=pltpu.CompilerParams(
            dimension_semantics=("parallel", "arbitrary"),
            vmem_limit_bytes=vmem_limit,
        ),
        cost_estimate=cost,
    )(est, gt)

    return jnp.sum(partial_sums) / B


def _fused_loss_ref(est, gt):
    """Pure-JAX reference mirroring asteroid SingleSrcNegSDR semantics."""
    est = est.astype(jnp.float32)
    gt = gt.astype(jnp.float32)
    est = est - jnp.mean(est, axis=1, keepdims=True)
    gt = gt - jnp.mean(gt, axis=1, keepdims=True)
    dot = jnp.sum(est * gt, axis=1, keepdims=True)
    s_energy = jnp.sum(gt ** 2, axis=1, keepdims=True) + EPS
    scaled = dot * gt / s_energy
    e_si = est - scaled
    si = 10.0 * jnp.log10(jnp.sum(scaled ** 2, axis=1)
                          / (jnp.sum(e_si ** 2, axis=1) + EPS) + EPS)
    e_snr = est - gt
    snr = 10.0 * jnp.log10(jnp.sum(gt ** 2, axis=1)
                           / (jnp.sum(e_snr ** 2, axis=1) + EPS) + EPS)
    return jnp.mean(-si + -snr)


if __name__ == "__main__":
    key = jax.random.PRNGKey(0)
    k1, k2, k3, k4, k5, k6 = jax.random.split(key, 6)

    # Case 1: small batch, unaligned T -> multi-tile streaming + in-kernel tail mask.
    B1, T1 = 4, 1000
    gt1 = jax.random.normal(k1, (B1, T1), dtype=jnp.float32)
    est1 = gt1 + 0.5 * jax.random.normal(k2, (B1, T1), dtype=jnp.float32)
    loss1 = fused_loss(est1, gt1, t_tile_cap=256)
    jax.block_until_ready(loss1)
    ref1 = _fused_loss_ref(est1, gt1)
    assert jnp.allclose(loss1, ref1, rtol=1e-3, atol=1e-3), (loss1, ref1)

    # Case 2: batch multiple of 8 -> two 'parallel' batch chunks (megacore path) + tail mask.
    B2, T2 = 16, 640
    gt2 = jax.random.normal(k3, (B2, T2), dtype=jnp.float32)
    est2 = gt2 + 0.5 * jax.random.normal(k4, (B2, T2), dtype=jnp.float32)
    loss2 = fused_loss(est2, gt2, t_tile_cap=256)
    jax.block_until_ready(loss2)
    ref2 = _fused_loss_ref(est2, gt2)
    assert jnp.allclose(loss2, ref2, rtol=1e-3, atol=1e-3), (loss2, ref2)

    # Case 3: default VMEM-derived tile, aligned T -> single unmasked tile.
    B3, T3 = 8, 1024
    gt3 = jax.random.normal(k5, (B3, T3), dtype=jnp.float32)
    est3 = gt3 + 0.5 * jax.random.normal(k6, (B3, T3), dtype=jnp.float32)
    loss3 = fused_loss(est3, gt3)
    jax.block_until_ready(loss3)
    ref3 = _fused_loss_ref(est3, gt3)
    assert jnp.allclose(loss3, ref3, rtol=1e-3, atol=1e-3), (loss3, ref3)

    print("KERNEL_OK")
</pallas_src>

<mosaic_0001>
module attributes {stable_mosaic.version = 11 : i64} {
  func.func @_fused_loss_kernel(%arg0: i32, %arg1: i32, %arg2: memref<4x256xf32, #tpu.memory_space<vmem>>, %arg3: memref<4x256xf32, #tpu.memory_space<vmem>>, %arg4: memref<1x1x1xf32, #tpu.memory_space<vmem>>, %arg5: memref<4x128xf32, #tpu.memory_space<vmem>>, %arg6: memref<4x128xf32, #tpu.memory_space<vmem>>, %arg7: memref<4x128xf32, #tpu.memory_space<vmem>>, %arg8: memref<4x128xf32, #tpu.memory_space<vmem>>, %arg9: memref<4x128xf32, #tpu.memory_space<vmem>>) attributes {dimension_semantics = [#tpu.dimension_semantics<parallel>, #tpu.dimension_semantics<arbitrary>], iteration_bounds = array<i64: 1, 4>, scalar_prefetch = 0 : i64, scratch_operands = 5 : i64, tpu.core_type = #tpu.core_type<tc>, window_params = [{transform_indices = @transform_0, window_bounds = array<i64: 4, 256>}, {transform_indices = @transform_1, window_bounds = array<i64: 4, 256>}, {transform_indices = @transform_2, window_bounds = array<i64: 1, 1, 1>}]} {
    %c0_i32 = arith.constant 0 : i32
    %0 = arith.cmpi eq, %arg1, %c0_i32 : i32
    %1 = arith.extui %0 : i1 to i32
    %c0_i32_0 = arith.constant 0 : i32
    %2 = arith.cmpi ne, %1, %c0_i32_0 : i32
    scf.if %2 {
      %cst = arith.constant 0.000000e+00 : f32
      %12 = vector.broadcast %cst : f32 to vector<4x128xf32>
      %c0 = arith.constant 0 : index
      %c0_6 = arith.constant 0 : index
      %13 = vector.load %arg5[%c0, %c0_6] : memref<4x128xf32, #tpu.memory_space<vmem>>, vector<4x128xf32>
      tpu.vector_store %arg5[%c0, %c0_6], %12 {strides = array<i32>} : memref<4x128xf32, #tpu.memory_space<vmem>>, vector<4x128xf32>,
      %c0_7 = arith.constant 0 : index
      %c0_8 = arith.constant 0 : index
      %14 = vector.load %arg6[%c0_7, %c0_8] : memref<4x128xf32, #tpu.memory_space<vmem>>, vector<4x128xf32>
      tpu.vector_store %arg6[%c0_7, %c0_8], %12 {strides = array<i32>} : memref<4x128xf32, #tpu.memory_space<vmem>>, vector<4x128xf32>,
      %c0_9 = arith.constant 0 : index
      %c0_10 = arith.constant 0 : index
      %15 = vector.load %arg7[%c0_9, %c0_10] : memref<4x128xf32, #tpu.memory_space<vmem>>, vector<4x128xf32>
      tpu.vector_store %arg7[%c0_9, %c0_10], %12 {strides = array<i32>} : memref<4x128xf32, #tpu.memory_space<vmem>>, vector<4x128xf32>,
      %c0_11 = arith.constant 0 : index
      %c0_12 = arith.constant 0 : index
      %16 = vector.load %arg8[%c0_11, %c0_12] : memref<4x128xf32, #tpu.memory_space<vmem>>, vector<4x128xf32>
      tpu.vector_store %arg8[%c0_11, %c0_12], %12 {strides = array<i32>} : memref<4x128xf32, #tpu.memory_space<vmem>>, vector<4x128xf32>,
      %c0_13 = arith.constant 0 : index
      %c0_14 = arith.constant 0 : index
      %17 = vector.load %arg9[%c0_13, %c0_14] : memref<4x128xf32, #tpu.memory_space<vmem>>, vector<4x128xf32>
      tpu.vector_store %arg9[%c0_13, %c0_14], %12 {strides = array<i32>} : memref<4x128xf32, #tpu.memory_space<vmem>>, vector<4x128xf32>,
    } else {
    }
    %c3_i32 = arith.constant 3 : i32
    %3 = arith.cmpi slt, %arg1, %c3_i32 : i32
    %4 = arith.extui %3 : i1 to i32
    %c0_i32_1 = arith.constant 0 : i32
    %5 = arith.cmpi ne, %4, %c0_i32_1 : i32
    scf.if %5 {
      %c0 = arith.constant 0 : index
      %c0_6 = arith.constant 0 : index
      %12 = vector.load %arg5[%c0, %c0_6] : memref<4x128xf32, #tpu.memory_space<vmem>>, vector<4x128xf32>
      %c0_7 = arith.constant 0 : index
      %c0_8 = arith.constant 0 : index
      %13 = vector.load %arg6[%c0_7, %c0_8] : memref<4x128xf32, #tpu.memory_space<vmem>>, vector<4x128xf32>
      %c0_9 = arith.constant 0 : index
      %c0_10 = arith.constant 0 : index
      %14 = vector.load %arg7[%c0_9, %c0_10] : memref<4x128xf32, #tpu.memory_space<vmem>>, vector<4x128xf32>
      %c0_11 = arith.constant 0 : index
      %c0_12 = arith.constant 0 : index
      %15 = vector.load %arg8[%c0_11, %c0_12] : memref<4x128xf32, #tpu.memory_space<vmem>>, vector<4x128xf32>
      %c0_13 = arith.constant 0 : index
      %c0_14 = arith.constant 0 : index
      %16 = vector.load %arg9[%c0_13, %c0_14] : memref<4x128xf32, #tpu.memory_space<vmem>>, vector<4x128xf32>
      %c0_i32_15 = arith.constant 0 : i32
      %c128_i32 = arith.constant 128 : i32
      %17 = arith.muli %c0_i32_15, %c128_i32 : i32
      %18 = tpu.assume_multiple %17, 128 : i32
      %c0_16 = arith.constant 0 : index
      %19 = arith.index_cast %18 : i32 to index
      %20 = vector.load %arg2[%c0_16, %19] : memref<4x256xf32, #tpu.memory_space<vmem>>, vector<4x128xf32>
      %c0_17 = arith.constant 0 : index
      %21 = arith.index_cast %18 : i32 to index
      %22 = vector.load %arg3[%c0_17, %21] : memref<4x256xf32, #tpu.memory_space<vmem>>, vector<4x128xf32>
      %23 = arith.addf %12, %20 : vector<4x128xf32>
      %24 = arith.addf %13, %22 : vector<4x128xf32>
      %25 = arith.mulf %20, %22 : vector<4x128xf32>
      %26 = arith.addf %14, %25 : vector<4x128xf32>
      %27 = arith.mulf %20, %20 : vector<4x128xf32>
      %28 = arith.addf %15, %27 : vector<4x128xf32>
      %29 = arith.mulf %22, %22 : vector<4x128xf32>
      %30 = arith.addf %16, %29 : vector<4x128xf32>
      %c1_i32 = arith.constant 1 : i32
      %c128_i32_18 = arith.constant 128 : i32
      %31 = arith.muli %c1_i32, %c128_i32_18 : i32
      %32 = tpu.assume_multiple %31, 128 : i32
      %c0_19 = arith.constant 0 : index
      %33 = arith.index_cast %32 : i32 to index
      %34 = vector.load %arg2[%c0_19, %33] : memref<4x256xf32, #tpu.memory_space<vmem>>, vector<4x128xf32>
      %c0_20 = arith.constant 0 : index
      %35 = arith.index_cast %32 : i32 to index
      %36 = vector.load %arg3[%c0_20, %35] : memref<4x256xf32, #tpu.memory_space<vmem>>, vector<4x128xf32>
      %37 = arith.addf %23, %34 : vector<4x128xf32>
      %38 = arith.addf %24, %36 : vector<4x128xf32>
      %39 = arith.mulf %34, %36 : vector<4x128xf32>
      %40 = arith.addf %26, %39 : vector<4x128xf32>
      %41 = arith.mulf %34, %34 : vector<4x128xf32>
      %42 = arith.addf %28, %41 : vector<4x128xf32>
      %43 = arith.mulf %36, %36 : vector<4x128xf32>
      %44 = arith.addf %30, %43 : vector<4x128xf32>
      %c2_i32 = arith.constant 2 : i32
      %c0_21 = arith.constant 0 : index
      %c0_22 = arith.constant 0 : index
      %45 = vector.load %arg5[%c0_21, %c0_22] : memref<4x128xf32, #tpu.memory_space<vmem>>, vector<4x128xf32>
      tpu.vector_store %arg5[%c0_21, %c0_22], %37 {strides = array<i32>} : memref<4x128xf32, #tpu.memory_space<vmem>>, vector<4x128xf32>,
      %c0_23 = arith.constant 0 : index
      %c0_24 = arith.constant 0 : index
      %46 = vector.load %arg6[%c0_23, %c0_24] : memref<4x128xf32, #tpu.memory_space<vmem>>, vector<4x128xf32>
      tpu.vector_store %arg6[%c0_23, %c0_24], %38 {strides = array<i32>} : memref<4x128xf32, #tpu.memory_space<vmem>>, vector<4x128xf32>,
      %c0_25 = arith.constant 0 : index
      %c0_26 = arith.constant 0 : index
      %47 = vector.load %arg7[%c0_25, %c0_26] : memref<4x128xf32, #tpu.memory_space<vmem>>, vector<4x128xf32>
      tpu.vector_store %arg7[%c0_25, %c0_26], %40 {strides = array<i32>} : memref<4x128xf32, #tpu.memory_space<vmem>>, vector<4x128xf32>,
      %c0_27 = arith.constant 0 : index
      %c0_28 = arith.constant 0 : index
      %48 = vector.load %arg8[%c0_27, %c0_28] : memref<4x128xf32, #tpu.memory_space<vmem>>, vector<4x128xf32>
      tpu.vector_store %arg8[%c0_27, %c0_28], %42 {strides = array<i32>} : memref<4x128xf32, #tpu.memory_space<vmem>>, vector<4x128xf32>,
      %c0_29 = arith.constant 0 : index
      %c0_30 = arith.constant 0 : index
      %49 = vector.load %arg9[%c0_29, %c0_30] : memref<4x128xf32, #tpu.memory_space<vmem>>, vector<4x128xf32>
      tpu.vector_store %arg9[%c0_29, %c0_30], %44 {strides = array<i32>} : memref<4x128xf32, #tpu.memory_space<vmem>>, vector<4x128xf32>,
    } else {
    }
    %c3_i32_2 = arith.constant 3 : i32
    %6 = arith.cmpi eq, %arg1, %c3_i32_2 : i32
    %7 = arith.extui %6 : i1 to i32
    %c0_i32_3 = arith.constant 0 : i32
    %8 = arith.cmpi ne, %7, %c0_i32_3 : i32
    scf.if %8 {
      %c0 = arith.constant 0 : index
      %c0_6 = arith.constant 0 : index
      %12 = vector.load %arg5[%c0, %c0_6] : memref<4x128xf32, #tpu.memory_space<vmem>>, vector<4x128xf32>
      %c0_7 = arith.constant 0 : index
      %c0_8 = arith.constant 0 : index
      %13 = vector.load %arg6[%c0_7, %c0_8] : memref<4x128xf32, #tpu.memory_space<vmem>>, vector<4x128xf32>
      %c0_9 = arith.constant 0 : index
      %c0_10 = arith.constant 0 : index
      %14 = vector.load %arg7[%c0_9, %c0_10] : memref<4x128xf32, #tpu.memory_space<vmem>>, vector<4x128xf32>
      %c0_11 = arith.constant 0 : index
      %c0_12 = arith.constant 0 : index
      %15 = vector.load %arg8[%c0_11, %c0_12] : memref<4x128xf32, #tpu.memory_space<vmem>>, vector<4x128xf32>
      %c0_13 = arith.constant 0 : index
      %c0_14 = arith.constant 0 : index
      %16 = vector.load %arg9[%c0_13, %c0_14] : memref<4x128xf32, #tpu.memory_space<vmem>>, vector<4x128xf32>
      %c0_i32_15 = arith.constant 0 : i32
      %c128_i32 = arith.constant 128 : i32
      %17 = arith.muli %c0_i32_15, %c128_i32 : i32
      %18 = tpu.assume_multiple %17, 128 : i32
      %c0_16 = arith.constant 0 : index
      %19 = arith.index_cast %18 : i32 to index
      %20 = vector.load %arg2[%c0_16, %19] : memref<4x256xf32, #tpu.memory_space<vmem>>, vector<4x128xf32>
      %c0_17 = arith.constant 0 : index
      %21 = arith.index_cast %18 : i32 to index
      %22 = vector.load %arg3[%c0_17, %21] : memref<4x256xf32, #tpu.memory_space<vmem>>, vector<4x128xf32>
      %23 = tpu.iota {dimensions = array<i32: 1>} : vector<4x128xi32>
      %24 = vector.broadcast %18 : i32 to vector<4x128xi32>
      %25 = arith.addi %24, %23 : vector<4x128xi32>
      %c232_i32 = arith.constant 232 : i32
      %26 = vector.broadcast %c232_i32 : i32 to vector<4x128xi32>
      %27 = arith.cmpi slt, %25, %26 : vector<4x128xi32>
      %cst = arith.constant 0.000000e+00 : f32
      %28 = vector.broadcast %cst : f32 to vector<4x128xf32>
      %29 = arith.select %27, %20, %28 : vector<4x128xi1>, vector<4x128xf32>
      %cst_18 = arith.constant 0.000000e+00 : f32
      %30 = vector.broadcast %cst_18 : f32 to vector<4x128xf32>
      %31 = arith.select %27, %22, %30 : vector<4x128xi1>, vector<4x128xf32>
      %32 = arith.addf %12, %29 : vector<4x128xf32>
      %33 = arith.addf %13, %31 : vector<4x128xf32>
      %34 = arith.mulf %29, %31 : vector<4x128xf32>
      %35 = arith.addf %14, %34 : vector<4x128xf32>
      %36 = arith.mulf %29, %29 : vector<4x128xf32>
      %37 = arith.addf %15, %36 : vector<4x128xf32>
      %38 = arith.mulf %31, %31 : vector<4x128xf32>
      %39 = arith.addf %16, %38 : vector<4x128xf32>
      %c1_i32 = arith.constant 1 : i32
      %c128_i32_19 = arith.constant 128 : i32
      %40 = arith.muli %c1_i32, %c128_i32_19 : i32
      %41 = tpu.assume_multiple %40, 128 : i32
      %c0_20 = arith.constant 0 : index
      %42 = arith.index_cast %41 : i32 to index
      %43 = vector.load %arg2[%c0_20, %42] : memref<4x256xf32, #tpu.memory_space<vmem>>, vector<4x128xf32>
      %c0_21 = arith.constant 0 : index
      %44 = arith.index_cast %41 : i32 to index
      %45 = vector.load %arg3[%c0_21, %44] : memref<4x256xf32, #tpu.memory_space<vmem>>, vector<4x128xf32>
      %46 = tpu.iota {dimensions = array<i32: 1>} : vector<4x128xi32>
      %47 = vector.broadcast %41 : i32 to vector<4x128xi32>
      %48 = arith.addi %47, %46 : vector<4x128xi32>
      %c232_i32_22 = arith.constant 232 : i32
      %49 = vector.broadcast %c232_i32_22 : i32 to vector<4x128xi32>
      %50 = arith.cmpi slt, %48, %49 : vector<4x128xi32>
      %cst_23 = arith.constant 0.000000e+00 : f32
      %51 = vector.broadcast %cst_23 : f32 to vector<4x128xf32>
      %52 = arith.select %50, %43, %51 : vector<4x128xi1>, vector<4x128xf32>
      %cst_24 = arith.constant 0.000000e+00 : f32
      %53 = vector.broadcast %cst_24 : f32 to vector<4x128xf32>
      %54 = arith.select %50, %45, %53 : vector<4x128xi1>, vector<4x128xf32>
      %55 = arith.addf %32, %52 : vector<4x128xf32>
      %56 = arith.addf %33, %54 : vector<4x128xf32>
      %57 = arith.mulf %52, %54 : vector<4x128xf32>
      %58 = arith.addf %35, %57 : vector<4x128xf32>
      %59 = arith.mulf %52, %52 : vector<4x128xf32>
      %60 = arith.addf %37, %59 : vector<4x128xf32>
      %61 = arith.mulf %54, %54 : vector<4x128xf32>
      %62 = arith.addf %39, %61 : vector<4x128xf32>
      %c2_i32 = arith.constant 2 : i32
      %c0_25 = arith.constant 0 : index
      %c0_26 = arith.constant 0 : index
      %63 = vector.load %arg5[%c0_25, %c0_26] : memref<4x128xf32, #tpu.memory_space<vmem>>, vector<4x128xf32>
      tpu.vector_store %arg5[%c0_25, %c0_26], %55 {strides = array<i32>} : memref<4x128xf32, #tpu.memory_space<vmem>>, vector<4x128xf32>,
      %c0_27 = arith.constant 0 : index
      %c0_28 = arith.constant 0 : index
      %64 = vector.load %arg6[%c0_27, %c0_28] : memref<4x128xf32, #tpu.memory_space<vmem>>, vector<4x128xf32>
      tpu.vector_store %arg6[%c0_27, %c0_28], %56 {strides = array<i32>} : memref<4x128xf32, #tpu.memory_space<vmem>>, vector<4x128xf32>,
      %c0_29 = arith.constant 0 : index
      %c0_30 = arith.constant 0 : index
      %65 = vector.load %arg7[%c0_29, %c0_30] : memref<4x128xf32, #tpu.memory_space<vmem>>, vector<4x128xf32>
      tpu.vector_store %arg7[%c0_29, %c0_30], %58 {strides = array<i32>} : memref<4x128xf32, #tpu.memory_space<vmem>>, vector<4x128xf32>,
      %c0_31 = arith.constant 0 : index
      %c0_32 = arith.constant 0 : index
      %66 = vector.load %arg8[%c0_31, %c0_32] : memref<4x128xf32, #tpu.memory_space<vmem>>, vector<4x128xf32>
      tpu.vector_store %arg8[%c0_31, %c0_32], %60 {strides = array<i32>} : memref<4x128xf32, #tpu.memory_space<vmem>>, vector<4x128xf32>,
      %c0_33 = arith.constant 0 : index
      %c0_34 = arith.constant 0 : index
      %67 = vector.load %arg9[%c0_33, %c0_34] : memref<4x128xf32, #tpu.memory_space<vmem>>, vector<4x128xf32>
      tpu.vector_store %arg9[%c0_33, %c0_34], %62 {strides = array<i32>} : memref<4x128xf32, #tpu.memory_space<vmem>>, vector<4x128xf32>,
    } else {
    }
    %c3_i32_4 = arith.constant 3 : i32
    %9 = arith.cmpi eq, %arg1, %c3_i32_4 : i32
    %10 = arith.extui %9 : i1 to i32
    %c0_i32_5 = arith.constant 0 : i32
    %11 = arith.cmpi ne, %10, %c0_i32_5 : i32
    scf.if %11 {
      %c0 = arith.constant 0 : index
      %c0_6 = arith.constant 0 : index
      %12 = vector.load %arg5[%c0, %c0_6] : memref<4x128xf32, #tpu.memory_space<vmem>>, vector<4x128xf32>
      %cst = arith.constant dense<0.000000e+00> : vector<4xf32>
      %13 = vector.multi_reduction <add>, %12, %cst [1] : vector<4x128xf32> to vector<4xf32>
      %14 = vector.shape_cast %13 : vector<4xf32> to vector<4x1xf32>
      %c0_7 = arith.constant 0 : index
      %c0_8 = arith.constant 0 : index
      %15 = vector.load %arg6[%c0_7, %c0_8] : memref<4x128xf32, #tpu.memory_space<vmem>>, vector<4x128xf32>
      %cst_9 = arith.constant dense<0.000000e+00> : vector<4xf32>
      %16 = vector.multi_reduction <add>, %15, %cst_9 [1] : vector<4x128xf32> to vector<4xf32>
      %17 = vector.shape_cast %16 : vector<4xf32> to vector<4x1xf32>
      %c0_10 = arith.constant 0 : index
      %c0_11 = arith.constant 0 : index
      %18 = vector.load %arg7[%c0_10, %c0_11] : memref<4x128xf32, #tpu.memory_space<vmem>>, vector<4x128xf32>
      %cst_12 = arith.constant dense<0.000000e+00> : vector<4xf32>
      %19 = vector.multi_reduction <add>, %18, %cst_12 [1] : vector<4x128xf32> to vector<4xf32>
      %20 = vector.shape_cast %19 : vector<4xf32> to vector<4x1xf32>
      %c0_13 = arith.constant 0 : index
      %c0_14 = arith.constant 0 : index
      %21 = vector.load %arg8[%c0_13, %c0_14] : memref<4x128xf32, #tpu.memory_space<vmem>>, vector<4x128xf32>
      %cst_15 = arith.constant dense<0.000000e+00> : vector<4xf32>
      %22 = vector.multi_reduction <add>, %21, %cst_15 [1] : vector<4x128xf32> to vector<4xf32>
      %23 = vector.shape_cast %22 : vector<4xf32> to vector<4x1xf32>
      %c0_16 = arith.constant 0 : index
      %c0_17 = arith.constant 0 : index
      %24 = vector.load %arg9[%c0_16, %c0_17] : memref<4x128xf32, #tpu.memory_space<vmem>>, vector<4x128xf32>
      %cst_18 = arith.constant dense<0.000000e+00> : vector<4xf32>
      %25 = vector.multi_reduction <add>, %24, %cst_18 [1] : vector<4x128xf32> to vector<4xf32>
      %26 = vector.shape_cast %25 : vector<4xf32> to vector<4x1xf32>
      %27 = arith.mulf %14, %17 : vector<4x1xf32>
      %cst_19 = arith.constant 1.000000e-03 : f32
      %28 = vector.broadcast %cst_19 : f32 to vector<4x1xf32>
      %29 = arith.mulf %27, %28 : vector<4x1xf32>
      %30 = arith.subf %20, %29 : vector<4x1xf32>
      %31 = arith.mulf %17, %17 : vector<4x1xf32>
      %cst_20 = arith.constant 1.000000e-03 : f32
      %32 = vector.broadcast %cst_20 : f32 to vector<4x1xf32>
      %33 = arith.mulf %31, %32 : vector<4x1xf32>
      %34 = arith.subf %26, %33 : vector<4x1xf32>
      %35 = arith.mulf %14, %14 : vector<4x1xf32>
      %cst_21 = arith.constant 1.000000e-03 : f32
      %36 = vector.broadcast %cst_21 : f32 to vector<4x1xf32>
      %37 = arith.mulf %35, %36 : vector<4x1xf32>
      %38 = arith.subf %23, %37 : vector<4x1xf32>
      %cst_22 = arith.constant 9.99999993E-9 : f32
      %39 = vector.broadcast %cst_22 : f32 to vector<4x1xf32>
      %40 = arith.addf %34, %39 : vector<4x1xf32>
      %41 = arith.divf %30, %40 : vector<4x1xf32>
      %42 = arith.mulf %41, %41 : vector<4x1xf32>
      %43 = arith.mulf %42, %34 : vector<4x1xf32>
      %cst_23 = arith.constant 2.000000e+00 : f32
      %44 = vector.broadcast %cst_23 : f32 to vector<4x1xf32>
      %45 = arith.mulf %44, %41 : vector<4x1xf32>
      %46 = arith.mulf %45, %30 : vector<4x1xf32>
      %47 = arith.subf %38, %46 : vector<4x1xf32>
      %48 = arith.addf %47, %43 : vector<4x1xf32>
      %cst_24 = arith.constant 9.99999993E-9 : f32
      %49 = vector.broadcast %cst_24 : f32 to vector<4x1xf32>
      %50 = arith.addf %48, %49 : vector<4x1xf32>
      %51 = arith.divf %43, %50 : vector<4x1xf32>
      %52 = arith.addf %38, %34 : vector<4x1xf32>
      %cst_25 = arith.constant 2.000000e+00 : f32
      %53 = vector.broadcast %cst_25 : f32 to vector<4x1xf32>
      %54 = arith.mulf %53, %30 : vector<4x1xf32>
      %55 = arith.subf %52, %54 : vector<4x1xf32>
      %cst_26 = arith.constant 9.99999993E-9 : f32
      %56 = vector.broadcast %cst_26 : f32 to vector<4x1xf32>
      %57 = arith.addf %55, %56 : vector<4x1xf32>
      %58 = arith.divf %34, %57 : vector<4x1xf32>
      %cst_27 = arith.constant 9.99999993E-9 : f32
      %59 = vector.broadcast %cst_27 : f32 to vector<4x1xf32>
      %60 = arith.addf %51, %59 : vector<4x1xf32>
      %cst_28 = arith.constant 9.99999993E-9 : f32
      %61 = vector.broadcast %cst_28 : f32 to vector<4x1xf32>
      %62 = arith.addf %58, %61 : vector<4x1xf32>
      %63 = arith.mulf %60, %62 : vector<4x1xf32>
      %64 = math.log %63 : vector<4x1xf32>
      %cst_29 = arith.constant 0.434294492 : f32
      %65 = vector.broadcast %cst_29 : f32 to vector<4x1xf32>
      %66 = arith.mulf %64, %65 : vector<4x1xf32>
      %cst_30 = arith.constant -1.000000e+01 : f32
      %67 = vector.broadcast %cst_30 : f32 to vector<4x1xf32>
      %68 = arith.mulf %67, %66 : vector<4x1xf32>
      %cst_31 = arith.constant dense<0.000000e+00> : vector<1xf32>
      %69 = vector.multi_reduction <add>, %68, %cst_31 [0] : vector<4x1xf32> to vector<1xf32>
      %70 = vector.shape_cast %69 : vector<1xf32> to vector<1x1xf32>
      %c0_32 = arith.constant 0 : index
      %c0_33 = arith.constant 0 : index
      %c0_34 = arith.constant 0 : index
      %71 = vector.load %arg4[%c0_32, %c0_33, %c0_34] : memref<1x1x1xf32, #tpu.memory_space<vmem>>, vector<1x1x1xf32>
      %72 = vector.shape_cast %71 : vector<1x1x1xf32> to vector<1x1xf32>
      %73 = vector.shape_cast %70 : vector<1x1xf32> to vector<1x1x1xf32>
      tpu.vector_store %arg4[%c0_32, %c0_33, %c0_34], %73 {strides = array<i32>} : memref<1x1x1xf32, #tpu.memory_space<vmem>>, vector<1x1x1xf32>,
    } else {
    }
    return
  }
  func.func @transform_0(%arg0: i32, %arg1: i32) -> (i32, i32) {
    %c0_i32 = arith.constant 0 : i32
    return %arg0, %arg1 : i32, i32
  }
  func.func @transform_1(%arg0: i32, %arg1: i32) -> (i32, i32) {
    %c0_i32 = arith.constant 0 : i32
    return %arg0, %arg1 : i32, i32
  }
  func.func @transform_2(%arg0: i32, %arg1: i32) -> (i32, i32, i32) {
    %c0_i32 = arith.constant 0 : i32
    %c0_i32_0 = arith.constant 0 : i32
    %c0_i32_1 = arith.constant 0 : i32
    return %arg0, %c0_i32, %c0_i32_0 : i32, i32, i32
  }
}

</mosaic_0001>

<bundles_post_ra>
// kernel: tpu_custom_call.1
= control target key start
LH: loop header
LB: loop body
LE: loop exit
PB: predicated region body
PF: predicated region fallthrough
CT: control target
= control target key end

     0   :  { %7 = vsyncpa [#allocation8], 0  ;;  %s890_s0 = inlined_call_operand.hbm [shape: f32[4,1000], index: 0, kind: input, shape index: {}]   ;;  %s891_s1 = inlined_call_operand.hbm [shape: f32[4,1000], index: 1, kind: input, shape index: {}]   ;;  %s892_s2 = inlined_call_operand.hbm [shape: f32[1,1,1], index: 2, kind: output, shape index: {}]  }
   0x1   :  { %9 = vsyncpa [#allocation8 + $0x1], 0 }
   0x2   :  { %10 = vsyncpa [#allocation11], 0 }
   0x3   :  { %12 = vsyncpa [#allocation11 + $0x1], 0 }
   0x4   :  { %13 = vsyncpa [#allocation9], 0  ;;  %s729_s9 = smov 0   ;;  %s731_s10 = smov 0  }
   0x5   :  { %s733_s11 = smov 0   ;;  %s735_s12 = smov 0  }
   0x6   :  { %s737_s13 = smov 0   ;;  %s739_s14 = smov 0  }
   0x7 LB: > { %s469_s15 = sadd.s32 4294967295, %s708_s14   ;;  %s28_s16 = sadd.s32 1, %s704_s13  ;;  %s708_s14 = sphi %s739_s14, %s19_s14   ;;  %s704_s13 = sphi %s737_s13, %s902_s13   ;;  %s700_s12 = sphi %s735_s12, %s901_s12   ;;  %s696_s11 = sphi %s733_s11, %s900_s11   ;;  %s692_s10 = sphi %s731_s10, %s899_s10   ;;  %s688_s9 = sphi %s729_s9, %s898_s9  }
   0x8   : > { %p29_p0 = scmp.ge.s32.totalorder %s28_s16, 4  ;;  %s40_s17 = sadd.s32 1, %s696_s11 }
   0x9   : > { %p47_p1 = scmp.ne.s32.totalorder %s696_s11, %s692_s10  ;;  %p48_p2 = scmp.eq.s32.totalorder %s708_s14, 0 }
   0xa   : > { %s904_s16 = smov (%p29_p0, %s28_s16), 0  ;;  %p53_p4 = scmp.ne.s32.totalorder %s692_s10, %s688_s9 }
   0xb   : > { %p765_p3 = por %p48_p2, %p47_p1  ;;  %s36_s19 = ssub.s32 %s704_s13, %s904_s16 }
   0xc   : > { %p54_p5 = scmp.eq.s32.totalorder %s469_s15, 0  ;;  %p38_p6 = scmp.eq.s32.totalorder %s36_s19, 0 }
   0xd   : > { %p509_p8 = scmp.lt.s32.totalorder %s708_s14, 4  ;;  %s783_s22 = sand.u32 1, %s696_s11  }
   0xe   : > { %p774_p7 = por %p54_p5, %p53_p4  ;;  %s492_s23 = sshll.u32 %s704_s13, 7 }
   0xf   : > { %s780_s21 = scalar_select %p38_p6, %s696_s11, %s40_s17  }
  0x10   : > { %s472_s24 = sshll.u32 %s783_s22, 3  ;;  %s143_s27 = scalar_lea.hbm %s890_s0, %s492_s23 }
  0x11   : > { %s135_s28 = scalar_lea.vmem [#allocation7], %s472_s24  ;;  %p792_p9 = pnand %p509_p8, %p765_p3 }
  0x12   : > { %s145_s29 = sshll.u32 %s135_s28, 4  ;;  %p478_p10 = scmp.ge.s32.totalorder %s708_s14, 1  ;;  %s146_s29 = int_to_ptr.vmem [resolvable:$true] %s145_s29 }
  0x13   : > { %p171_p11 = scmp.lt.s32.totalorder %s708_s14, 5  ;;  %s132_s3 = scalar_lea.sflag [#allocation8], %s783_s22 }
  0x14   : > { %p572_p12 = pneg %p792_p9  ;;  %s583_s4 = scalar_lea.vmem %s146_s29, 128 }
  0x15   : > { %p584_p13 = scmp.ne.s32.totalorder %s146_s29, %s583_s4  ;;  %s710_s5 = smov [#allocation7]  }
  0x16   : > { %s588_s6 = sshll.u32 %s710_s5, 4  ;;  %s589_s6 = int_to_ptr.vmem [resolvable:$false] %s588_s6 }
  0x17   : > { %p586_p0 = pnand %p584_p13, %p572_p12  ;;  %s590_s7 = scalar_lea.vmem %s589_s6, 256 }
  0x18   : > { %p591_p2 = scmp.lt.s32.totalorder %s146_s29, %s589_s6  ;;  %p592_p3 = scmp.lt.s32.totalorder %s590_s7, %s583_s4 }
  0x19   : > { %p587_p1 = pneg %p586_p0 }
  0x1a   : > { %p593_p4 = por %p592_p3, %p591_p2 }
  0x1c   : > { %p594_p5 = pnand %p593_p4, %p587_p1 }
  0x1e   : > { %597 = shalt.err (!%p594_p5)
}
  0x1f   : > { %505 = dma.hbm_to_vmem [thread:$0]  (!%p792_p9), %s143_s27, 128, %s146_s29, %s132_s3  }
  0x20   : > { %p810_p6 = pnand %p478_p10, %p171_p11  ;;  %s164_s18 = scalar_lea.hbm %s891_s1, %s492_s23 }
  0x21   : > { %s156_s19 = scalar_lea.vmem [#allocation10], %s472_s24  ;;  %s153_s26 = scalar_lea.sflag [#allocation11], %s783_s22 }
  0x22   : > { %s166_s25 = sshll.u32 %s156_s19, 4  ;;  %s711_s27 = smov [#allocation10]   ;;  %s167_s25 = int_to_ptr.vmem [resolvable:$true] %s166_s25 }
  0x23   : > { %s611_s28 = scalar_lea.vmem %s167_s25, 128  ;;  %s616_s29 = sshll.u32 %s711_s27, 4  ;;  %s617_s29 = int_to_ptr.vmem [resolvable:$false] %s616_s29 }
  0x24   : > { %p612_p8 = scmp.ne.s32.totalorder %s167_s25, %s611_s28  ;;  %s618_s3 = scalar_lea.vmem %s617_s29, 256 }
  0x25   : > { %p619_p10 = scmp.lt.s32.totalorder %s167_s25, %s617_s29  ;;  %p620_p11 = scmp.lt.s32.totalorder %s618_s3, %s611_s28 }
  0x26   : > { %p614_p13 = pnand %p612_p8, %p572_p12 }
  0x27   : > { %p621_p1 = por %p620_p11, %p619_p10 }
  0x28   : > { %p615_p0 = pneg %p614_p13 }
  0x2a   : > { %p622_p2 = pnand %p621_p1, %p615_p0 }
  0x2c   : > { %625 = shalt.err (!%p622_p2)
}
  0x2d   : > { %508 = dma.hbm_to_vmem [thread:$0]  (!%p792_p9), %s164_s18, 128, %s167_s25, %s153_s26  }
  0x2e   : > { %175 = sbr.rel (%p810_p6) target bundleno = 349 (0x15d), region = 28  ;;  %s177_s22 = sand.u32 (!%p810_p6), 1, %s692_s10  }
  0x2f   : > { %s479_s23 = sshll.u32 (!%p810_p6), %s177_s22, 3  ;;  %s178_s24 = scalar_lea.sflag (!%p810_p6), [#allocation8], %s177_s22 }
  0x30   : > { %s826_s4 = scalar_lea.vmem (!%p810_p6), [#allocation7], %s479_s23 }
  0x33   : > { %675 = dma.done.wait (%p774_p7), %s178_s24, 128  }
  0x34   : > { %677 = vsyncadd (%p774_p7), %s178_s24, 4294967168  ;;  %s187_s5 = scalar_lea.sflag [#allocation11], %s177_s22  ;;  %s832_s6 = scalar_lea.vmem [#allocation10], %s479_s23 }
  0x35   : > { %679 = dma.done.wait (%p774_p7), %s187_s5, 128  }
  0x36   : > { %681 = vsyncadd (%p774_p7), %s187_s5, 4294967168  ;;  %p481_p9 = scmp.ne.s32.totalorder %s700_s12, 0 }
  0x38   : > { %216 = sbr.rel (%p481_p9) target bundleno = 65 (0x41), region = 40 }
  0x3d   : > { %v712_v0 = vmov 0.0  }
  0x3e   : > { %217 = vst [vmem:[#allocation2] sm:$0xf] %v712_v0  ;;  %218 = vst [vmem:[#allocation3] sm:$0xf] %v712_v0 }
  0x3f   : > { %219 = vst [vmem:[#allocation4] sm:$0xf] %v712_v0  ;;  %220 = vst [vmem:[#allocation5] sm:$0xf] %v712_v0 }
  0x40   : > { %221 = vst [vmem:[#allocation6] sm:$0xf] %v712_v0 }
  0x41 PF: > { %p482_p12 = scmp.ge.s32.totalorder %s700_s12, 3 }
  0x43   : > { %225 = sbr.rel (%p482_p12) target bundleno = 82 (0x52), region = 44 }
  0x48   : > { %v226_v1 = vld [vmem:[#allocation2] sm:$0xf]  ;;  %v231_v2 = vld [vmem:[%s826_s4] sm:$0xf]  ;;  %v227_v5 = vld [vmem:[#allocation3] sm:$0xf] }
  0x49   : > { %v483_v3 = vld [vmem:[%s826_s4 + $0x4] sm:$0xf]  ;;  %v233_v4 = vadd.f32 %v231_v2, %v226_v1  ;;  %v232_v6 = vld [vmem:[%s832_s6] sm:$0xf]  ;;  %v484_v7 = vld [vmem:[%s832_s6 + $0x4] sm:$0xf]  ;;  %v237_v8 = vmul.f32 %v231_v2, %v231_v2 }
  0x4a   : > { %v249_v9 = vmul.f32 %v483_v3, %v483_v3  ;;  %v234_v10 = vadd.f32 %v232_v6, %v227_v5  ;;  %v228_v11 = vld [vmem:[#allocation4] sm:$0xf]  ;;  %v235_v12 = vmul.f32 %v232_v6, %v231_v2  ;;  %v247_v13 = vmul.f32 %v484_v7, %v483_v3  ;;  %v229_v14 = vld [vmem:[#allocation5] sm:$0xf]  ;;  %v230_v15 = vld [vmem:[#allocation6] sm:$0xf] }
  0x4b   : > { %v239_v16 = vmul.f32 %v232_v6, %v232_v6  ;;  %v245_v17 = vadd.f32 %v483_v3, %v233_v4  ;;  %v238_v18 = vadd.f32 %v237_v8, %v229_v14  ;;  %v251_v19 = vmul.f32 %v484_v7, %v484_v7 }
  0x4c   : > { %v246_v20 = vadd.f32 %v484_v7, %v234_v10  ;;  %v236_v21 = vadd.f32 %v235_v12, %v228_v11 }
  0x4d   : > { %v240_v22 = vadd.f32 %v239_v16, %v230_v15  ;;  %253 = vst [vmem:[#allocation2] sm:$0xf] %v245_v17  ;;  %v250_v23 = vadd.f32 %v249_v9, %v238_v18 }
  0x4e   : > { %254 = vst [vmem:[#allocation3] sm:$0xf] %v246_v20  ;;  %v248_v24 = vadd.f32 %v247_v13, %v236_v21 }
  0x4f   : > { %v252_v25 = vadd.f32 %v251_v19, %v240_v22  ;;  %256 = vst [vmem:[#allocation5] sm:$0xf] %v250_v23 }
  0x50   : > { %255 = vst [vmem:[#allocation4] sm:$0xf] %v248_v24 }
  0x51   : > { %257 = vst [vmem:[#allocation6] sm:$0xf] %v252_v25 }
  0x52 PF: > { %p485_p7 = scmp.ne.s32.totalorder %s700_s12, 3 }
  0x54   : > { %261 = sbr.rel (%p485_p7) target bundleno = 334 (0x14e), region = 48 }
  0x59   : > { %v263_v26 = vld [vmem:[#allocation3] sm:$0xf]  ;;  %v269_v27 = vlaneseq  ;;  %v262_v29 = vld [vmem:[#allocation2] sm:$0xf]  ;;  %v267_v30 = vld [vmem:[%s826_s4] sm:$0xf] }
  0x5a   : > { %v268_v28 = vld [vmem:[%s832_s6] sm:$0xf]  ;;  %v487_v34 = vld [vmem:[%s832_s6 + $0x4] sm:$0xf]  ;;  %v280_v37 = vmul.f32 %v267_v30, %v267_v30  ;;  %v276_v40 = vadd.f32 %v267_v30, %v262_v29  ;;  %v486_v41 = vld [vmem:[%s826_s4 + $0x4] sm:$0xf] }
  0x5b   : > { %v270_v31 = vand.u32 127, %v269_v27  ;;  %v282_v32 = vmul.f32 %v268_v28, %v268_v28  ;;  %v278_v33 = vmul.f32 %v268_v28, %v267_v30  ;;  %v266_v35 = vld [vmem:[#allocation6] sm:$0xf]  ;;  %v264_v36 = vld [vmem:[#allocation4] sm:$0xf]  ;;  %v277_v38 = vadd.f32 %v268_v28, %v263_v26 }
  0x5c   : > { %v265_v42 = vld [vmem:[#allocation5] sm:$0xf]  ;;  %vm307_vm1 = vcmask 1043456   ;;  %vm368_vm2 = vcmask 0  }
  0x5d   : > { %v289_v39 = vadd.s32 128, %v270_v31  ;;  %v283_v43 = vadd.f32 %v282_v32, %v266_v35  ;;  %v279_v44 = vadd.f32 %v278_v33, %v264_v36  ;;  %v281_v47 = vadd.f32 %v280_v37, %v265_v42 }
  0x5f   : > { %vm290_vm0 = vcmp.lt.s32.totalorder %v289_v39, 232 }
  0x60   : > { %v292_v45 = vsel %vm290_vm0, %v487_v34, 0.0  ;;  %v291_v46 = vsel %vm290_vm0, %v486_v41, 0.0 }
  0x61   : > { %v294_v48 = vadd.f32 %v292_v45, %v277_v38  ;;  %v293_v49 = vadd.f32 %v291_v46, %v276_v40  ;;  %v299_v50 = vmul.f32 %v292_v45, %v292_v45  ;;  %v295_v51 = vmul.f32 %v292_v45, %v291_v46 }
  0x62   : > { %v297_v52 = vmul.f32 %v291_v46, %v291_v46 }
  0x63   : > { %302 = vst [vmem:[#allocation3] sm:$0xf] %v294_v48  ;;  %301 = vst [vmem:[#allocation2] sm:$0xf] %v293_v49  ;;  %v300_v53 = vadd.f32 %v299_v50, %v283_v43  ;;  %v296_v54 = vadd.f32 %v295_v51, %v279_v44 }
  0x64   : > { %v298_v55 = vadd.f32 %v297_v52, %v281_v47 }
  0x65   : > { %305 = vst [vmem:[#allocation6] sm:$0xf] %v300_v53  ;;  %303 = vst [vmem:[#allocation4] sm:$0xf] %v296_v54 }
  0x66   : > { %304 = vst [vmem:[#allocation5] sm:$0xf] %v298_v55 }
  0x6a   : > { %v311_v56 = vld [vmem:[#allocation3] sm:$0xf]  ;;  %v306_v57 = vld [vmem:[#allocation2] sm:$0xf] }
  0x6b   : > { %v312_v58 = vsel %vm307_vm1, %v311_v56, 0.0  ;;  %v308_v59 = vsel %vm307_vm1, %v306_v57, 0.0 }
  0x6c   : > { %313 = vadd.xlane.f32.xlu0 %v312_v58  ;;  %309 = vadd.xlane.f32.xlu1 %v308_v59  ;;  %v323_v60 = vld [vmem:[#allocation6] sm:$0xf]  ;;  %v315_v61 = vld [vmem:[#allocation4] sm:$0xf] }
  0x6d   : > { %v324_v62 = vsel %vm307_vm1, %v323_v60, 0.0  ;;  %v316_v63 = vsel %vm307_vm1, %v315_v61, 0.0  ;;  %v319_v0 = vld [vmem:[#allocation5] sm:$0xf] }
  0x6e   : > { %v320_v1 = vsel %vm307_vm1, %v319_v0, 0.0 }
  0x70   : > { %325 = vadd.xlane.f32.xlu0 %v324_v62  ;;  %317 = vadd.xlane.f32.xlu1 %v316_v63 }
  0x74   : > { %321 = vadd.xlane.f32.xlu0 %v320_v1 }
  0xf5   : > { %v314_v2 = vpop.xlane.xlu0 %313  ;;  %v310_v7 = vpop.xlane.xlu1 %309 }
  0xf6   : > { %v330_v3 = vmul.f32 %v314_v2, %v314_v2  ;;  %v333_v8 = vmul.f32 %v310_v7, %v310_v7  ;;  %v327_v10 = vmul.f32 %v314_v2, %v310_v7 }
  0xf8   : > { %v331_v4 = vmul.f32 0.001, %v330_v3  ;;  %v334_v11 = vmul.f32 0.001, %v333_v8  ;;  %v328_v13 = vmul.f32 0.001, %v327_v10 }
  0xf9   : > { %v326_v5 = vpop.xlane.xlu0 %325  ;;  %v318_v14 = vpop.xlane.xlu1 %317 }
  0xfa   : > { %v332_v6 = vsub.f32 %v326_v5, %v331_v4  ;;  %v329_v16 = vsub.f32 %v318_v14, %v328_v13 }
  0xfc   : > { %v336_v9 = vadd.f32 1e-08, %v332_v6  ;;  %v349_v18 = vmul.f32 2.0, %v329_v16 }
  0xfd   : > { %v322_v12 = vpop.xlane.xlu0 %321 }
  0xfe   : > { %562 = vrcp.f32 %v336_v9  ;;  %v335_v15 = vsub.f32 %v322_v12, %v334_v11 }
 0x100   : > { %v348_v17 = vadd.f32 %v335_v15, %v332_v6 }
 0x102   : > { %v350_v21 = vsub.f32 %v348_v17, %v349_v18 }
 0x104   : > { %v351_v25 = vadd.f32 1e-08, %v350_v21 }
 0x106   : > { %564 = vrcp.f32 %v351_v25 }
 0x10b   : > { %v563_v19 = vpop.eup %562 }
 0x10c   : > { %v338_v20 = vmul.f32 %v563_v19, %v329_v16 }
 0x10e   : > { %v339_v22 = vmul.f32 %v338_v20, %v338_v20  ;;  %v341_v23 = vmul.f32 2.0, %v338_v20 }
 0x110   : > { %v342_v24 = vmul.f32 %v341_v23, %v329_v16  ;;  %v340_v26 = vmul.f32 %v339_v22, %v332_v6 }
 0x112   : > { %v343_v27 = vsub.f32 %v335_v15, %v342_v24 }
 0x113   : > { %v565_v30 = vpop.eup %564 }
 0x114   : > { %v344_v28 = vadd.f32 %v343_v27, %v340_v26  ;;  %v353_v31 = vmul.f32 %v565_v30, %v332_v6 }
 0x116   : > { %v345_v29 = vadd.f32 1e-08, %v344_v28  ;;  %v355_v35 = vadd.f32 1e-08, %v353_v31 }
 0x118   : > { %566 = vrcp.f32 %v345_v29 }
 0x125   : > { %v567_v32 = vpop.eup %566 }
 0x126   : > { %v347_v33 = vmul.f32 %v567_v32, %v340_v26 }
 0x128   : > { %v354_v34 = vadd.f32 1e-08, %v347_v33 }
 0x12a   : > { %v356_v36 = vmul.f32 %v355_v35, %v354_v34 }
 0x12c   : > { %568 = vlog2.f32 %v356_v36 }
 0x139   : > { %v569_v37 = vpop.eup %568 }
 0x13a   : > { %v358_v38 = vmul.f32 0.6931472, %v569_v37 }
 0x13c   : > { %v359_v39 = vmul.f32 0.4342945, %v358_v38 }
 0x13e   : > { %v360_v40 = vmul.f32 -10.0, %v359_v39 }
 0x140   : > { %v361_v41 = vsel %vm307_vm1, %v360_v40, 0.0 }
 0x141   : > { %v362_v42 = vrot.slane %v361_v41, 4 }
 0x143   : > { %v363_v43 = vadd.f32 %v362_v42, %v361_v41 }
 0x145   : > { %v364_v44 = vrot.slane %v363_v43, 2 }
 0x147   : > { %v365_v45 = vadd.f32 %v364_v44, %v363_v43 }
 0x149   : > { %v366_v46 = vrot.slane %v365_v45, 1 }
 0x14b   : > { %v367_v47 = vadd.f32 %v366_v46, %v365_v45 }
 0x14d   : > { %369 = vst.msk [vmem:[#allocation12] sm:$0x1] %vm368_vm2, %v367_v47 }
 0x14e PF: > { %p857_p3 = scmp.eq.s32.totalorder %s469_s15, 3  ;;  %s713_s20 = smov [#allocation12]  }
 0x14f   : > { %s379_s30 = sshll.u32 %s713_s20, 4  ;;  %s380_s30 = int_to_ptr.vmem [resolvable:$true] %s379_s30 }
 0x150   : > { %s626_s7 = scalar_lea.vmem %s380_s30, 16  ;;  %s632_s8 = scalar_lea.vmem %s380_s30, 32 }
 0x151   : > { %p627_p4 = scmp.ne.s32.totalorder %s380_s30, %s626_s7  ;;  %p633_p8 = scmp.lt.s32.totalorder %s380_s30, %s380_s30 }
 0x152   : > { %p634_p13 = scmp.lt.s32.totalorder %s632_s8, %s626_s7 }
 0x153   : > { %p628_p5 = pnand %p627_p4, %p857_p3 }
 0x154   : > { %p635_p0 = por %p634_p13, %p633_p8 }
 0x155   : > { %p629_p6 = pneg %p628_p5 }
 0x157   : > { %p636_p10 = pnand %p635_p0, %p629_p6 }
 0x159   : > { %639 = shalt.err (!%p636_p10)
}
 0x15a   : > { %499 = dma.vmem_to_hbm [thread:$0]  (%p857_p3), %s380_s30, 16, %s892_s2, [#allocation9]  }
 0x15b   : > { %683 = dma.done.wait (%p857_p3), [#allocation9], 16  }
 0x15c   : > { %685 = vsyncadd (%p857_p3), [#allocation9], 4294967280 }
 0x15d PF: > { %s19_s14 = sadd.s32 1, %s708_s14   ;;  %s898_s9 = smov %s692_s10 }
 0x15e   : > { %p16_p11 = scmp.ge.s32.totalorder %s19_s14, 6   ;;  %s899_s10 = smov %s696_s11 }
 0x15f   : > { %s900_s11 = smov %s780_s21  ;;  %s901_s12 = smov %s704_s13 }
 0x160   : > { %s902_s13 = smov %s904_s16  ;;  %18 = sbr.rel (!%p16_p11) target bundleno = 7 (0x7), region = 95 }
 0x165   :  { %392 = vsyncpa [#allocation8], 1 }
 0x166   :  { %394 = vsyncpa [#allocation8 + $0x1], 1 }
 0x167   :  { %395 = vsyncpa [#allocation11], 1 }
 0x168   :  { %397 = vsyncpa [#allocation11 + $0x1], 1 }
 0x169   :  { %398 = vsyncpa [#allocation9], 1 }
 0x16a   :  { %400 = vsyncpa [#allocation9 + $0x1], 1 }

</bundles_post_ra>
